<compile_context>
chip_gen: v5e
topology: v5e:2x2
jax: 0.10.0
libtpu: 0.0.40
codegen_flags: <defaults>
</compile_context>

<pallas_src>
import jax
import jax.numpy as jnp
from jax.experimental import pallas as pl
from jax.experimental.pallas import tpu as pltpu


# ---------------------------------------------------------------------------
# Kernels
# ---------------------------------------------------------------------------

def _softmax_weights(x_ref, w1_ref, b1_ref, w2_ref, b2_ref, B_blk, T):
    """MLP scores + block-local softmax. Returns (B_blk, T) f32 weights."""
    # Linear(h_dim, 24): one MXU pass over every row of the tile, f32 accumulate.
    h = jnp.dot(x_ref[...], w1_ref[...], preferred_element_type=jnp.float32)
    h = jnp.maximum(h + b1_ref[...], 0.0)                          # bias + ReLU (VPU)

    # Linear(24, 1) as a VPU broadcast-multiply + lane reduction (a single-column
    # MXU matmul would waste the array).  b2 is a scalar read from SMEM.
    s = jnp.sum(h * w2_ref[...], axis=-1, keepdims=True) + b2_ref[0, 0]   # (R, 1)

    # Regroup rows into (batch, time): softmax axis moves onto lanes.  This is a
    # sublane->lane relayout (XLU/copy work) but it buys a per-batch lane
    # reduction; cheap relative to the x DMA.
    s = s.reshape(B_blk, T)
    m = jnp.max(s, axis=-1, keepdims=True)
    e = jnp.exp(s - m)
    # Exact normalization — downstream code may assume rows sum to 1.
    return e / jnp.sum(e, axis=-1, keepdims=True)


def _attn_kernel(x_ref, w1_ref, b1_ref, w2_ref, b2_ref, o_ref):
    B_blk, T = o_ref.shape
    o_ref[...] = _softmax_weights(x_ref, w1_ref, b1_ref, w2_ref, b2_ref, B_blk, T)


def _attn_context_kernel(x_ref, w1_ref, b1_ref, w2_ref, b2_ref, o_ref, ctx_ref):
    # Fused downstream pooling: x tile is already resident in VMEM, so the
    # weighted sum over T is nearly free; done separately it would re-read x.
    B_blk, T = o_ref.shape
    w = _softmax_weights(x_ref, w1_ref, b1_ref, w2_ref, b2_ref, B_blk, T)
    o_ref[...] = w
    x3 = x_ref[...].astype(jnp.float32).reshape(B_blk, T, x_ref.shape[-1])
    ctx_ref[...] = jnp.sum(w[:, :, None] * x3, axis=1)             # (B_blk, H)


# ---------------------------------------------------------------------------
# Tiling / chip-budget helpers
# ---------------------------------------------------------------------------

def _vmem_capacity_bytes():
    try:
        return int(pltpu.get_tpu_info().vmem_capacity_bytes)
    except Exception:
        return 64 << 20        # be conservative (v7x-sized) if the query fails


def _chip_budgets():
    cap = _vmem_capacity_bytes()
    if cap <= (64 << 20):
        # v7x: 64 MiB physical VMEM, 2 TensorCores per chip.
        return dict(tile_budget=12 << 20, vmem_cap=48 << 20, prefer_multi_block=True)
    # v5e / v6e: 128 MiB physical VMEM, single TensorCore.
    return dict(tile_budget=24 << 20, vmem_cap=100 << 20, prefer_multi_block=False)


def _pick_batch_block(B, T, H, elem_bytes, *, tile_budget, prefer_multi_block):
    """Pick B_blk dividing B so that
       * each block holds whole batch elements (softmax stays block-local),
       * the (B_blk, T) output tile satisfies the sublane rule (B_blk % 8 == 0,
         unless the block is the full array),
       * the (B_blk*T, H) x tile is 16-row aligned for packed bf16,
       * the x tile fits the per-chip VMEM tile budget,
       * (v7x) >= 2 grid steps whenever B allows it, so both TensorCores work."""
    row_bytes = T * H * elem_bytes
    r_align = 16 if elem_bytes == 2 else 8          # packed bf16 rows tile at (16,128)
    cands = [d for d in range(8, B, 8)
             if B % d == 0 and (d * T) % r_align == 0 and d * row_bytes <= tile_budget]
    full_fits = B * row_bytes <= tile_budget
    if full_fits and not (prefer_multi_block and cands):
        return B                                    # one big block covers everything
    if cands:
        return max(cands)                           # biggest legal tile -> fewest grid steps
    if full_fits:
        return B
    raise ValueError(
        f"Attn kernel: cannot tile batch={B} (T={T}, H={H}, {elem_bytes}B/elem) within "
        f"the {tile_budget >> 20} MiB VMEM tile budget; batch must be divisible by a "
        "multiple of 8 whose tile fits, or the whole input must fit in one block.")


# ---------------------------------------------------------------------------
# Wrapper
# ---------------------------------------------------------------------------

def attn_forward(x, w1, b1, w2, b2, *, fuse_context=False):
    """Pallas forward for the PyTorch `Attn` module.

    x : (B, T, H) activations, f32 or bf16.  x is consumed in whatever dtype the
        producer provides — the wrapper never casts it (that would add a full
        extra HBM pass over x, the dominant traffic of this mem-bound kernel).
    Returns softmax(scores) of shape (B, T, 1) (module semantics); with
    fuse_context=True additionally returns sum_t softmax_t * x_t of shape (B, H).
    """
    B, T, H = x.shape
    K = w1.shape[-1]
    elem_bytes = jnp.dtype(x.dtype).itemsize

    budgets = _chip_budgets()
    B_blk = _pick_batch_block(B, T, H, elem_bytes,
                              tile_budget=budgets["tile_budget"],
                              prefer_multi_block=budgets["prefer_multi_block"])
    assert B % B_blk == 0
    grid = (B // B_blk,)
    R_blk = B_blk * T                               # rows per MXU pass

    x_flat = x.reshape(B * T, H)                    # layout no-op, no dtype cast
    w1 = w1.astype(x.dtype)                         # tiny (H*K) cast so MXU inputs match
    b1 = jnp.asarray(b1, jnp.float32).reshape(1, K)
    w2_row = jnp.asarray(w2, jnp.float32).reshape(1, K)   # (24,1) -> (1,24) row for the VPU reduce
    b2 = jnp.asarray(b2, jnp.float32).reshape(1, 1)       # scalar -> SMEM

    # Scoped-VMEM budget: double-buffered x + outputs, lane-padded h intermediate
    # (K=24 pads to 128 lanes in f32), weights + compiler scratch headroom; capped
    # per generation (v7x has only 64 MiB physical VMEM, v5e/v6e have 128 MiB).
    in_tile = R_blk * H * elem_bytes
    h_tile = R_blk * 128 * 4
    out_tile = B_blk * max(T, 128) * 4
    ctx_tile = (B_blk * max(H, 128) * 4) if fuse_context else 0
    need = 2 * in_tile + 2 * out_tile + 2 * ctx_tile + h_tile + (4 << 20)
    vmem_limit = int(min(budgets["vmem_cap"], max(16 << 20, need)))

    in_specs = [
        pl.BlockSpec((R_blk, H), lambda i: (i, 0)),           # big row tile of x
        pl.BlockSpec((H, K), lambda i: (0, 0)),               # W1 (full)
        pl.BlockSpec((1, K), lambda i: (0, 0)),               # b1
        pl.BlockSpec((1, K), lambda i: (0, 0)),               # W2 as a row
        pl.BlockSpec(memory_space=pltpu.MemorySpace.SMEM),    # b2 scalar in SMEM
    ]
    weight_spec = pl.BlockSpec((B_blk, T), lambda i: (i, 0))
    compiler_params = pltpu.CompilerParams(
        dimension_semantics=("parallel",),
        vmem_limit_bytes=vmem_limit,
    )

    if fuse_context:
        weights, context = pl.pallas_call(
            _attn_context_kernel,
            out_shape=(jax.ShapeDtypeStruct((B, T), jnp.float32),
                       jax.ShapeDtypeStruct((B, H), jnp.float32)),
            grid_spec=pltpu.PrefetchScalarGridSpec(
                num_scalar_prefetch=0, grid=grid, in_specs=in_specs,
                out_specs=[weight_spec,
                           pl.BlockSpec((B_blk, H), lambda i: (i, 0))]),
            compiler_params=compiler_params,
        )(x_flat, w1, b1, w2_row, b2)
        return weights[..., None], context

    weights = pl.pallas_call(
        _attn_kernel,
        out_shape=jax.ShapeDtypeStruct((B, T), jnp.float32),
        grid_spec=pltpu.PrefetchScalarGridSpec(
            num_scalar_prefetch=0, grid=grid, in_specs=in_specs,
            out_specs=weight_spec),
        compiler_params=compiler_params,
    )(x_flat, w1, b1, w2_row, b2)
    return weights[..., None]                       # unsqueeze(2) done in the wrapper


def attn_reference(x, w1, b1, w2, b2):
    """Pure-JAX reference mirroring the PyTorch forward (f32)."""
    B, T, H = x.shape
    flat = x.reshape(-1, H).astype(jnp.float32)
    h = jnp.maximum(flat @ jnp.asarray(w1, jnp.float32)
                    + jnp.asarray(b1, jnp.float32).reshape(1, -1), 0.0)
    s = (h @ jnp.asarray(w2, jnp.float32).reshape(-1, 1)
         + jnp.asarray(b2, jnp.float32).reshape(1, 1)).reshape(B, T)
    return jax.nn.softmax(s, axis=1)[..., None]


if __name__ == "__main__":
    key = jax.random.PRNGKey(0)
    B, T, H, K = 2, 8, 32, 24   # batch=2, seq=8, h_dim=32

    k_x, k_w1, k_b1, k_w2, k_b2 = jax.random.split(key, 5)
    x = jax.random.normal(k_x, (B, T, H), dtype=jnp.float32)
    # Parameters stored as (in, out) so the kernel does x @ W (== PyTorch x @ W.T).
    w1 = jax.random.normal(k_w1, (H, K), dtype=jnp.float32) * 0.1
    b1 = jax.random.normal(k_b1, (K,), dtype=jnp.float32) * 0.1
    w2 = jax.random.normal(k_w2, (K, 1), dtype=jnp.float32) * 0.1
    b2 = jax.random.normal(k_b2, (1,), dtype=jnp.float32) * 0.1

    ref_w = attn_reference(x, w1, b1, w2, b2)

    # --- f32 path: module semantics (softmax weights only) --------------------
    out = jax.block_until_ready(attn_forward(x, w1, b1, w2, b2))
    assert out.shape == (B, T, 1)
    assert jnp.allclose(out, ref_w, atol=1e-3, rtol=1e-3), "f32 weights mismatch"

    # --- f32 path with fused downstream pooling (context) ---------------------
    out_w, out_ctx = attn_forward(x, w1, b1, w2, b2, fuse_context=True)
    out_w, out_ctx = jax.block_until_ready((out_w, out_ctx))
    ref_ctx = jnp.sum(ref_w * x, axis=1)
    assert out_w.shape == (B, T, 1) and out_ctx.shape == (B, H)
    assert jnp.allclose(out_w, ref_w, atol=1e-3, rtol=1e-3), "fused weights mismatch"
    assert jnp.allclose(out_ctx, ref_ctx, atol=2e-3, rtol=2e-3), "fused context mismatch"

    # --- bf16-activation path: x arrives from the producer already in bf16;
    #     the wrapper performs NO cast (that would add an extra HBM pass). ------
    x_bf16 = x.astype(jnp.bfloat16)
    ref_bf16 = attn_reference(x_bf16.astype(jnp.float32), w1, b1, w2, b2)
    out_bf16 = jax.block_until_ready(attn_forward(x_bf16, w1, b1, w2, b2))
    assert out_bf16.shape == (B, T, 1)
    assert jnp.allclose(out_bf16, ref_bf16, atol=3e-2, rtol=3e-2), "bf16 weights mismatch"

    print("KERNEL_OK")
</pallas_src>

<mosaic_0001>
module attributes {stable_mosaic.version = 11 : i64} {
  func.func @_attn_kernel(%arg0: i32, %arg1: memref<16x32xf32, #tpu.memory_space<vmem>>, %arg2: memref<32x24xf32, #tpu.memory_space<vmem>>, %arg3: memref<1x24xf32, #tpu.memory_space<vmem>>, %arg4: memref<1x24xf32, #tpu.memory_space<vmem>>, %arg5: memref<1x1xf32, #tpu.memory_space<smem>>, %arg6: memref<2x8xf32, #tpu.memory_space<vmem>>) attributes {dimension_semantics = [#tpu.dimension_semantics<parallel>], iteration_bounds = array<i64: 1>, scalar_prefetch = 0 : i64, scratch_operands = 0 : i64, tpu.core_type = #tpu.core_type<tc>, window_params = [{transform_indices = @transform_0, window_bounds = array<i64: 16, 32>}, {pipeline_mode = #tpu.pipeline_mode<synchronous>, transform_indices = @transform_1, window_bounds = array<i64: 32, 24>}, {pipeline_mode = #tpu.pipeline_mode<synchronous>, transform_indices = @transform_2, window_bounds = array<i64: 1, 24>}, {pipeline_mode = #tpu.pipeline_mode<synchronous>, transform_indices = @transform_3, window_bounds = array<i64: 1, 24>}, {transform_indices = @transform_4, window_bounds = array<i64: 1, 1>}, {transform_indices = @transform_5, window_bounds = array<i64: 2, 8>}]} {
    %c0 = arith.constant 0 : index
    %c0_0 = arith.constant 0 : index
    %0 = vector.load %arg1[%c0, %c0_0] : memref<16x32xf32, #tpu.memory_space<vmem>>, vector<16x32xf32>
    %c0_1 = arith.constant 0 : index
    %c0_2 = arith.constant 0 : index
    %1 = vector.load %arg2[%c0_1, %c0_2] : memref<32x24xf32, #tpu.memory_space<vmem>>, vector<32x24xf32>
    %cst = arith.constant dense<0.000000e+00> : vector<16x24xf32>
    %2 = tpu.matmul %0, %1, %cst {dimension_numbers = #tpu.dot_dimension_numbers<[1], [0], [0], [1], [0, 0, 1, 1], [], []>} : vector<16x32xf32>, vector<32x24xf32>, vector<16x24xf32> -> vector<16x24xf32>
    %c0_3 = arith.constant 0 : index
    %c0_4 = arith.constant 0 : index
    %3 = vector.load %arg3[%c0_3, %c0_4] : memref<1x24xf32, #tpu.memory_space<vmem>>, vector<1x24xf32>
    %4 = vector.broadcast %3 : vector<1x24xf32> to vector<16x24xf32>
    %5 = arith.addf %2, %4 : vector<16x24xf32>
    %cst_5 = arith.constant 0.000000e+00 : f32
    %6 = vector.broadcast %cst_5 : f32 to vector<16x24xf32>
    %7 = arith.maximumf %5, %6 : vector<16x24xf32>
    %c0_6 = arith.constant 0 : index
    %c0_7 = arith.constant 0 : index
    %8 = vector.load %arg4[%c0_6, %c0_7] : memref<1x24xf32, #tpu.memory_space<vmem>>, vector<1x24xf32>
    %9 = vector.broadcast %8 : vector<1x24xf32> to vector<16x24xf32>
    %10 = arith.mulf %7, %9 : vector<16x24xf32>
    %cst_8 = arith.constant dense<0.000000e+00> : vector<16xf32>
    %11 = vector.multi_reduction <add>, %10, %cst_8 [1] : vector<16x24xf32> to vector<16xf32>
    %12 = vector.shape_cast %11 : vector<16xf32> to vector<16x1xf32>
    %c0_9 = arith.constant 0 : index
    %c0_10 = arith.constant 0 : index
    %13 = memref.load %arg5[%c0_9, %c0_10] : memref<1x1xf32, #tpu.memory_space<smem>>
    %14 = vector.broadcast %13 : f32 to vector<16x1xf32>
    %15 = arith.addf %12, %14 : vector<16x1xf32>
    %16 = vector.shape_cast %15 : vector<16x1xf32> to vector<2x8xf32>
    %cst_11 = arith.constant dense<0xFF800000> : vector<2xf32>
    %17 = vector.multi_reduction <maximumf>, %16, %cst_11 [1] : vector<2x8xf32> to vector<2xf32>
    %18 = vector.shape_cast %17 : vector<2xf32> to vector<2x1xf32>
    %19 = vector.broadcast %18 : vector<2x1xf32> to vector<2x8xf32>
    %20 = arith.subf %16, %19 : vector<2x8xf32>
    %21 = math.exp %20 : vector<2x8xf32>
    %cst_12 = arith.constant dense<0.000000e+00> : vector<2xf32>
    %22 = vector.multi_reduction <add>, %21, %cst_12 [1] : vector<2x8xf32> to vector<2xf32>
    %23 = vector.shape_cast %22 : vector<2xf32> to vector<2x1xf32>
    %24 = vector.broadcast %23 : vector<2x1xf32> to vector<2x8xf32>
    %25 = arith.divf %21, %24 : vector<2x8xf32>
    %c0_13 = arith.constant 0 : index
    %c0_14 = arith.constant 0 : index
    %26 = vector.load %arg6[%c0_13, %c0_14] : memref<2x8xf32, #tpu.memory_space<vmem>>, vector<2x8xf32>
    tpu.vector_store %arg6[%c0_13, %c0_14], %25 {strides = array<i32>} : memref<2x8xf32, #tpu.memory_space<vmem>>, vector<2x8xf32>,
    return
  }
  func.func @transform_0(%arg0: i32) -> (i32, i32) {
    %c0_i32 = arith.constant 0 : i32
    %c0_i32_0 = arith.constant 0 : i32
    return %arg0, %c0_i32 : i32, i32
  }
  func.func @transform_1(%arg0: i32) -> (i32, i32) {
    %c0_i32 = arith.constant 0 : i32
    %c0_i32_0 = arith.constant 0 : i32
    %c0_i32_1 = arith.constant 0 : i32
    return %c0_i32, %c0_i32_0 : i32, i32
  }
  func.func @transform_2(%arg0: i32) -> (i32, i32) {
    %c0_i32 = arith.constant 0 : i32
    %c0_i32_0 = arith.constant 0 : i32
    %c0_i32_1 = arith.constant 0 : i32
    return %c0_i32, %c0_i32_0 : i32, i32
  }
  func.func @transform_3(%arg0: i32) -> (i32, i32) {
    %c0_i32 = arith.constant 0 : i32
    %c0_i32_0 = arith.constant 0 : i32
    %c0_i32_1 = arith.constant 0 : i32
    return %c0_i32, %c0_i32_0 : i32, i32
  }
  func.func @transform_4(%arg0: i32) -> (i32, i32) {
    %c0_i32 = arith.constant 0 : i32
    %c0_i32_0 = arith.constant 0 : i32
    %c0_i32_1 = arith.constant 0 : i32
    return %c0_i32, %c0_i32_0 : i32, i32
  }
  func.func @transform_5(%arg0: i32) -> (i32, i32) {
    %c0_i32 = arith.constant 0 : i32
    %c0_i32_0 = arith.constant 0 : i32
    return %arg0, %c0_i32 : i32, i32
  }
}

</mosaic_0001>

<bundles_post_ra>
// kernel: tpu_custom_call.1
= control target key start
LH: loop header
LB: loop body
LE: loop exit
PB: predicated region body
PF: predicated region fallthrough
CT: control target
= control target key end

     0   :  { %s307_s0 = inlined_call_operand.vmem [shape: f32[16,32], index: 0, kind: input, shape index: {}]   ;;  %s308_s1 = inlined_call_operand.vmem [shape: f32[32,24], index: 1, kind: input, shape index: {}]   ;;  %s309_s2 = inlined_call_operand.vmem [shape: f32[1,24], index: 2, kind: input, shape index: {}]   ;;  %s310_s3 = inlined_call_operand.vmem [shape: f32[1,24], index: 3, kind: input, shape index: {}]   ;;  %s311_s4 = inlined_call_operand.<no memory space> [shape: f32[1,1], index: 4, kind: input, shape index: {}]   ;;  %s312_s5 = inlined_call_operand.hbm [shape: f32[2,8], index: 5, kind: output, shape index: {}]  }
   0x1   :  { %v27_v0 = vld [vmem:[%s308_s1 + $0x18] sm:$0xff]  ;;  %v26_v1 = vld [vmem:[%s308_s1 + $0x10] sm:$0xff]  ;;  %v25_v2 = vld [vmem:[%s308_s1 + $0x8] sm:$0xff] }
   0x2   :  { %51 = vmatpush.msra.mxu0 %v27_v0  ;;  %186 = vmatpush.msra.mxu1 %v27_v0 }
   0x4   :  { %52 = vmatpush.msra.mxu0 %v26_v1  ;;  %187 = vmatpush.msra.mxu1 %v26_v1 }
   0x5   :  { %11 = vsyncpa [#allocation4], 0  ;;  %v24_v3 = vld [vmem:[%s308_s1] sm:$0xff]  ;;  %vm32_vm0 = vcmask 261120   ;;  %v23_v5 = vld [vmem:[%s307_s0 + $0x8] sm:$0xff]  ;;  %vm70_vm1 = vcmask 195584   ;;  %v83_v19 = vlaneseq  ;;  %v78_v20 = vstv %s311_s4 }
   0x6   :  { %53 = vmatpush.msra.mxu0 %v25_v2  ;;  %v22_v4 = vld [vmem:[%s307_s0] sm:$0xff]  ;;  %188 = vmatpush.msra.mxu1 %v25_v2  ;;  %vm87_vm2 = vcmask 1041409   ;;  %vm90_vm3 = vcmask 58368   ;;  %v231_v29 = vmov 0   ;;  %s175_s10 = sshll.u32 %s312_s5, 4  ;;  %s176_s10 = int_to_ptr.hbm [resolvable:$true] %s175_s10 }
   0x7   :  { %v195_v6 = vld [vmem:[%s309_s2] ss:$0 sm:$0xff]  ;;  %v290_v21 = vand.u32 127, %v83_v19  ;;  %193 = vset.pattern.permute.xlu2 %v231_v29  ;;  %192 = vset.pattern.permute.xlu1 %v231_v29 }
   0x8   :  { %54 = vmatpush.msra.mxu0 %v24_v3  ;;  %189 = vmatpush.msra.mxu1 %v24_v3  ;;  %v196_v11 = vld [vmem:[%s310_s3] ss:$0 sm:$0xff]  ;;  %s232_s3 = smov [#allocation3]  }
   0x9   :  { %184 = vmatmul.msk.f32.vlgmr.msra.gmra.mxu0 %vm32_vm0, %v22_v4  ;;  %185 = vmatmul.msk.f32.vlgmr.msra.gmra.mxu1 %vm32_vm0, %v23_v5  ;;  %s173_s4 = sshll.u32 %s232_s3, 4  ;;  %s174_s4 = int_to_ptr.vmem [resolvable:$true] %s173_s4 }
   0xa   :  { %194 = vset.pattern.permute.xlu0 %v231_v29 }
  0x86   :  { %v56_v7 = vpop.f32.mrf.mxu0  ;;  %v59_v8 = vpop.f32.mrf.mxu1 }
  0x87   :  { %v57_v9 = vadd.f32 %v195_v6, %v56_v7  ;;  %v60_v10 = vadd.f32 %v195_v6, %v59_v8 }
  0x89   :  { %v62_v12 = vmax.f32 %v57_v9, 0.0  ;;  %v63_v13 = vmax.f32 %v60_v10, 0.0 }
  0x8b   :  { %v68_v14 = vmul.f32 %v196_v11, %v62_v12  ;;  %v69_v16 = vmul.f32 %v196_v11, %v63_v13 }
  0x8d   :  { %v71_v15 = vsel %vm70_vm1, %v68_v14, 0.0  ;;  %v74_v17 = vsel %vm70_vm1, %v69_v16, 0.0 }
  0x8e   :  { %72 = vadd.xlane.f32.xlu0 %v71_v15 }
  0x96   :  { %75 = vadd.xlane.f32.xlu0 %v74_v17 }
 0x101   :  { %v73_v18 = vpop.xlane.xlu0 %72 }
 0x102   :  { %v79_v22 = vadd.f32 %v78_v20, %v73_v18 }
 0x104   :  { %v85_v25 = vperm.slane %v79_v22, %v290_v21 }
 0x109   :  { %v76_v23 = vpop.xlane.xlu0 %75 }
 0x10a   :  { %v80_v24 = vadd.f32 %v78_v20, %v76_v23 }
 0x10c   :  { %v86_v26 = vperm.slane %v80_v24, %v290_v21 }
 0x10e   :  { %v88_v27 = vsel %vm87_vm2, %v86_v26, %v85_v25 }
 0x10f   :  { %v91_v28 = vsel %vm90_vm3, %v88_v27, -inf }
 0x110   :  { %92 = vmax.xlane.f32.xlu1 %v91_v28 }
 0x183   :  { %v93_v30 = vpop.xlane.xlu1 %92 }
 0x184   :  { %v95_v31 = vperm.slane %v93_v30, 0  ;;  %v96_v32 = vperm.slane %v93_v30, 1 }
 0x186   :  { %v99_v33 = vsub.f32 %v79_v22, %v95_v31  ;;  %v100_v34 = vsub.f32 %v80_v24, %v96_v32 }
 0x188   :  { %v101_v35 = vmul.f32 1.442695, %v99_v33  ;;  %v103_v36 = vmul.f32 1.442695, %v100_v34 }
 0x18a   :  { %197 = vpow2.f32 %v101_v35 }
 0x18b   :  { %199 = vpow2.f32 %v103_v36 }
 0x190   :  { %v198_v37 = vpop.eup %197 }
 0x191   :  { %v200_v38 = vpop.eup %199  ;;  %108 = vperm.xlu1 %192, %v198_v37  }
 0x192   :  { %111 = vperm.xlu2 %193, %v200_v38  }
 0x1ec   :  { %v112_v39 = vpop.permute.xlu2 %111 }
 0x1ed   :  { %v114_v41 = vperm.slane %v112_v39, %v290_v21 }
 0x203   :  { %v109_v40 = vpop.permute.xlu1 %108 }
 0x204   :  { %v113_v42 = vperm.slane %v109_v40, %v290_v21 }
 0x206   :  { %v115_v43 = vsel %vm87_vm2, %v114_v41, %v113_v42 }
 0x207   :  { %v117_v44 = vsel %vm90_vm3, %v115_v43, 0.0 }
 0x208   :  { %118 = vadd.xlane.f32.xlu2 %v117_v44 }
 0x27b   :  { %v119_v45 = vpop.xlane.xlu2 %118 }
 0x27c   :  { %v121_v46 = vperm.slane %v119_v45, 0  ;;  %v122_v47 = vperm.slane %v119_v45, 1 }
 0x27e   :  { %201 = vrcp.f32 %v121_v46  ;;  %v136_v54 = vand.u32 2147483648, %v121_v46  ;;  %v151_v55 = vand.u32 2147483648, %v122_v47  ;;  %v134_v57 = vand.u32 2147483647, %v121_v46 }
 0x27f   :  { %203 = vrcp.f32 %v122_v47  ;;  %v149_v59 = vand.u32 2147483647, %v122_v47  ;;  %vm130_vm6 = vweird.f32 %v121_v46  ;;  %vm145_vm7 = vweird.f32 %v122_v47 }
 0x280   :  { %v137_v62 = vor.u32 1.1754944e-38, %v136_v54  ;;  %v152_v63 = vor.u32 1.1754944e-38, %v151_v55  ;;  %vm135_vm10 = vcmp.eq.f32.partialorder %v134_v57, 8.507059e+37 }
 0x281   :  { %vm150_vm11 = vcmp.eq.f32.partialorder %v149_v59, 8.507059e+37 }
 0x284   :  { %v202_v48 = vpop.eup %201 }
 0x285   :  { %v204_v49 = vpop.eup %203  ;;  %v126_v50 = vmul.f32 %v202_v48, %v121_v46  ;;  %vm131_vm4 = vweird.f32 %v202_v48 }
 0x286   :  { %v141_v51 = vmul.f32 %v204_v49, %v122_v47  ;;  %vm146_vm5 = vweird.f32 %v204_v49  ;;  %vm132_vm8 = vmor %vm130_vm6, %vm131_vm4 }
 0x287   :  { %v127_v52 = vsub.f32 1.0, %v126_v50  ;;  %vm147_vm9 = vmor %vm145_vm7, %vm146_vm5 }
 0x288   :  { %v142_v53 = vsub.f32 1.0, %v141_v51 }
 0x289   :  { %v128_v56 = vmul.f32 %v202_v48, %v127_v52 }
 0x28a   :  { %v143_v58 = vmul.f32 %v204_v49, %v142_v53 }
 0x28b   :  { %v129_v60 = vadd.f32 %v202_v48, %v128_v56 }
 0x28c   :  { %v144_v61 = vadd.f32 %v204_v49, %v143_v58 }
 0x28d   :  { %v133_v0 = vsel %vm132_vm8, %v202_v48, %v129_v60 }
 0x28e   :  { %v148_v1 = vsel %vm147_vm9, %v204_v49, %v144_v61  ;;  %v138_v2 = vsel %vm135_vm10, %v137_v62, %v133_v0 }
 0x28f   :  { %v153_v3 = vsel %vm150_vm11, %v152_v63, %v148_v1  ;;  %v139_v4 = vmul.f32 %v198_v37, %v138_v2 }
 0x290   :  { %v154_v5 = vmul.f32 %v200_v38, %v153_v3 }
 0x291   :  { %158 = vperm.xlu0 %194, %v139_v4  }
 0x292   :  { %161 = vperm.xlu1 %192, %v154_v5  }
 0x303   :  { %v159_v6 = vpop.permute.xlu0 %158 }
 0x304   :  { %v162_v7 = vpop.permute.xlu1 %161  ;;  %v163_v8 = vperm.slane %v159_v6, %v290_v21 }
 0x305   :  { %v164_v9 = vperm.slane %v162_v7, %v290_v21 }
 0x307   :  { %v165_v10 = vsel %vm87_vm2, %v164_v9, %v163_v8 }
 0x308   :  { %167 = vst.msk [vmem:[#allocation3] sm:$0x3] %vm90_vm3, %v165_v10 }
 0x309   :  { %178 = dma.vmem_to_hbm [thread:$0]  %s174_s4, 32, %s176_s10, [#allocation4]  }
 0x30a   :  { %229 = dma.done.wait [#allocation4], 32  }
 0x30b   :  { %230 = vsyncadd [#allocation4], 4294967264 }
 0x30c   :  { %183 = vsyncpa [#allocation4], 1 }

</bundles_post_ra>
